<compile_context>
chip_gen: v6e
topology: v6e:2x2x1
jax: 0.10.0
libtpu: 0.0.40
codegen_flags: <defaults>
</compile_context>

<pallas_src>
import functools

import jax
import jax.numpy as jnp
from jax.experimental import pallas as pl
from jax.experimental.pallas import tpu as pltpu

_LANE = 128


def _round_up(x: int, m: int) -> int:
    return -(-x // m) * m


def _sublane_multiple(dtype) -> int:
    # packed-dtype sublane tile: f32 -> 8, bf16 -> 16, int8/fp8 -> 32
    return {4: 8, 2: 16, 1: 32}.get(jnp.dtype(dtype).itemsize, 8)


def _vmem_limit(need_bytes: int) -> int:
    # `need_bytes` already counts double-buffered in+out blocks; add headroom.
    return int(min(max(32 << 20, 2 * need_bytes), 64 << 20))


# ---------------------------------------------------------------------------
# Kernels
# ---------------------------------------------------------------------------
def _pool_lane_groups_kernel(x_ref, o_ref, *, scale: int, group: int, chans: int):
    """Lane-dense pooling.

    x_ref: (TR, group*scale*chans) VMEM tile
    o_ref: (TR, group*chans)       VMEM tile
    out[:, g*chans + c] = mean_s x[:, (g*scale + s)*chans + c]

    Only static ref slices + VPU adds: the block's last dims are full array
    dims, so the HBM<->VMEM DMAs and the final writeback are fully lane-dense.
    """
    inv = 1.0 / scale
    for g in range(group):
        base = g * scale * chans
        acc = x_ref[:, base:base + chans].astype(jnp.float32)
        for s in range(1, scale):
            lo = base + s * chans
            acc = acc + x_ref[:, lo:lo + chans].astype(jnp.float32)
        o_ref[:, g * chans:(g + 1) * chans] = (acc * inv).astype(o_ref.dtype)


def _pool_rows_kernel(x_ref, o_ref, *, scale: int):
    """Sublane-strided pooling (fallback for wide channels / no clean fold).

    x_ref: (TRo*scale, C) VMEM tile; o_ref: (TRo, C) VMEM tile.
    """
    tro = o_ref.shape[0]
    acc0 = x_ref[pl.ds(0, tro, stride=scale), :].astype(jnp.float32)
    if scale >= 4:
        # two interleaved accumulators break the serial VPU dependence chain
        acc1 = x_ref[pl.ds(1, tro, stride=scale), :].astype(jnp.float32)
        for s in range(2, scale):
            term = x_ref[pl.ds(s, tro, stride=scale), :].astype(jnp.float32)
            if s % 2 == 0:
                acc0 = acc0 + term
            else:
                acc1 = acc1 + term
        acc0 = acc0 + acc1
    else:
        for s in range(1, scale):
            acc0 = acc0 + x_ref[pl.ds(s, tro, stride=scale), :].astype(jnp.float32)
    o_ref[...] = (acc0 * (1.0 / scale)).astype(o_ref.dtype)


# ---------------------------------------------------------------------------
# Tiling helpers
# ---------------------------------------------------------------------------
def _pick_group(n_rows: int, c: int, scale: int, *,
                max_out_lanes: int = 512, max_unroll: int = 256) -> int:
    """How many output positions to fold into the lane axis.

    Must divide n_rows (so the wrapper reshape is exact); target >= 128 dense
    output lanes; bounded so the unrolled slice count stays small."""
    g_cap = min(max(1, max_out_lanes // c), max(1, max_unroll // max(1, scale)),
                n_rows)
    if g_cap < 2:
        return 1
    g_target = -(-_LANE // c)                      # smallest g with g*c >= 128
    for g in range(g_target, g_cap + 1):           # smallest divisor >= target
        if n_rows % g == 0:
            return g
    for g in range(g_cap, 1, -1):                  # else largest divisor <= cap
        if n_rows % g == 0:
            return g
    return 1


def _pick_row_tile(n_rows: int, bytes_per_out_row: int, mult: int,
                   block_bytes: int) -> int:
    """Output-row tile: multiple of `mult` (or the full dim), sized so one
    (input + output) block stays near `block_bytes`, with >= 2 grid steps
    whenever possible (v7x has 2 TensorCores)."""
    if n_rows <= mult:
        return n_rows
    t = max(mult, (block_bytes // max(1, bytes_per_out_row)) // mult * mult)
    t = min(t, n_rows // mult * mult)
    if t >= n_rows and n_rows >= 2 * mult:
        t = _round_up(-(-n_rows // 2), mult)
    return max(mult, t)


# ---------------------------------------------------------------------------
# Wrapper
# ---------------------------------------------------------------------------
def _avg_pool_seq(x: jax.Array, scale: int, *,
                  block_bytes: int = 4 << 20) -> jax.Array:
    """x: (B, L, C) -> (B, L // scale, C), avg pool with kernel=stride=scale."""
    B, L, C = x.shape
    if scale == 1:
        return x
    lo = L // scale
    if lo == 0:
        return jnp.zeros((B, 0, C), x.dtype)
    if lo * scale != L:
        x = x[:, : lo * scale, :]       # rare: avg_pool1d floor / drop-tail

    isz = jnp.dtype(x.dtype).itemsize
    mult = _sublane_multiple(x.dtype)
    n_out = B * lo

    group = _pick_group(n_out, C, scale) if C < _LANE else 1

    if group >= 2:
        # Lane-dense path: free contiguous reshape folding `group` output
        # positions (x their `scale` pool slots) into the lane axis.
        wi, wo = group * scale * C, group * C
        nr = n_out // group
        x2 = x.reshape(nr, wi)
        in_row = _round_up(wi, _LANE) * isz          # lane-PADDED row bytes
        out_row = _round_up(wo, _LANE) * isz
        tr = _pick_row_tile(nr, in_row + out_row, mult, block_bytes)
        need = 2 * tr * (in_row + out_row)           # double-buffered in + out
        kernel = functools.partial(_pool_lane_groups_kernel, scale=scale,
                                   group=group, chans=C)
        y = pl.pallas_call(
            kernel,
            out_shape=jax.ShapeDtypeStruct((nr, wo), x.dtype),
            grid_spec=pltpu.PrefetchScalarGridSpec(
                num_scalar_prefetch=0,
                grid=(pl.cdiv(nr, tr),),
                in_specs=[pl.BlockSpec((tr, wi), lambda t: (t, 0))],
                out_specs=pl.BlockSpec((tr, wo), lambda t: (t, 0)),
            ),
            compiler_params=pltpu.CompilerParams(
                dimension_semantics=("parallel",),
                vmem_limit_bytes=_vmem_limit(need),
            ),
        )(x2)
        return y.reshape(B, lo, C)

    # Fallback: sublane-strided pooling over batch-folded rows (B*Lo*scale, C).
    x2 = x.reshape(n_out * scale, C)
    row = _round_up(C, _LANE) * isz
    tro = _pick_row_tile(n_out, (scale + 1) * row, mult, block_bytes)
    need = 2 * tro * (scale + 1) * row
    kernel = functools.partial(_pool_rows_kernel, scale=scale)
    y = pl.pallas_call(
        kernel,
        out_shape=jax.ShapeDtypeStruct((n_out, C), x.dtype),
        grid_spec=pltpu.PrefetchScalarGridSpec(
            num_scalar_prefetch=0,
            grid=(pl.cdiv(n_out, tro),),
            in_specs=[pl.BlockSpec((tro * scale, C), lambda t: (t, 0))],
            out_specs=pl.BlockSpec((tro, C), lambda t: (t, 0)),
        ),
        compiler_params=pltpu.CompilerParams(
            dimension_semantics=("parallel",),
            vmem_limit_bytes=_vmem_limit(need),
        ),
    )(x2)
    return y.reshape(B, lo, C)


def moving_avg(x, scale: int = 1, if_all: bool = False, data_num: int = 3,
               *, block_bytes: int = 4 << 20):
    """JAX/Pallas port of models/model_Informer.py::moving_avg.forward."""
    if x is None:
        return None
    if if_all:
        B, L, C, dn_in = x.shape
        n = 3 if data_num == 3 else 2      # PyTorch stacks 3 slices iff data_num==3
        assert n <= dn_in, (n, dn_in)
        # Pool ALL dn_in series in one fused, lane-dense call (an input
        # last-dim slice would force a full strided HBM copy of x); slice the
        # (scale-times smaller) output instead.
        y = _avg_pool_seq(x.reshape(B, L, C * dn_in), scale,
                          block_bytes=block_bytes)
        y = y.reshape(B, y.shape[1], C, dn_in)
        return y if n == dn_in else y[..., :n]
    return _avg_pool_seq(x, scale, block_bytes=block_bytes)


# ---------------------------------------------------------------------------
# Pure-JAX reference + tests
# ---------------------------------------------------------------------------
def _ref_avg_pool_seq(x, scale):
    B, L, C = x.shape
    lo = L // scale
    xt = x[:, : lo * scale, :].astype(jnp.float32)
    return jnp.mean(xt.reshape(B, lo, scale, C), axis=2).astype(x.dtype)


def _ref_moving_avg(x, scale, if_all=False, data_num=3):
    if if_all:
        n = 3 if data_num == 3 else 2
        return jnp.stack([_ref_avg_pool_seq(x[..., i], scale) for i in range(n)],
                         axis=3)
    return _ref_avg_pool_seq(x, scale)


if __name__ == "__main__":
    key = jax.random.PRNGKey(0)
    ks = jax.random.split(key, 8)

    # 1) if_all=False, lane-dense path.
    x = jax.random.normal(ks[0], (2, 16, 8), dtype=jnp.float32)
    out = jax.block_until_ready(moving_avg(x, scale=2))
    assert out.shape == (2, 8, 8)
    assert jnp.allclose(out, _ref_moving_avg(x, 2), atol=1e-5, rtol=1e-5)

    # 2) if_all=True, data_num=3: one fused lane-dense call over C*data_num lanes.
    x4 = jax.random.normal(ks[1], (2, 16, 8, 3), dtype=jnp.float32)
    out4 = jax.block_until_ready(moving_avg(x4, scale=4, if_all=True, data_num=3))
    assert out4.shape == (2, 4, 8, 3)
    assert jnp.allclose(out4, _ref_moving_avg(x4, 4, True, 3), atol=1e-5, rtol=1e-5)

    # 3) if_all=True, data_num != 3 (n=2 < 4): pool all series, slice the output.
    x5 = jax.random.normal(ks[2], (2, 16, 4, 4), dtype=jnp.float32)
    out5 = jax.block_until_ready(moving_avg(x5, scale=2, if_all=True, data_num=2))
    assert out5.shape == (2, 8, 4, 2)
    assert jnp.allclose(out5, _ref_moving_avg(x5, 2, True, 2), atol=1e-5, rtol=1e-5)

    # 4) Multi-tile lane-dense path (tiny block budget -> 3 tiles, last partial).
    x6 = jax.random.normal(ks[3], (2, 288, 8), dtype=jnp.float32)
    out6 = jax.block_until_ready(moving_avg(x6, scale=2, block_bytes=8 * 1024))
    assert out6.shape == (2, 144, 8)
    assert jnp.allclose(out6, _ref_moving_avg(x6, 2), atol=1e-5, rtol=1e-5)

    # 5) Wide-channel fallback (C >= 128): sublane-strided kernel, 2 row tiles.
    x7 = jax.random.normal(ks[4], (2, 32, 256), dtype=jnp.float32)
    out7 = jax.block_until_ready(moving_avg(x7, scale=4))
    assert out7.shape == (2, 8, 256)
    assert jnp.allclose(out7, _ref_moving_avg(x7, 4), atol=1e-5, rtol=1e-5)

    # 6) L not a multiple of scale (floor / drop-tail semantics).
    x8 = jax.random.normal(ks[5], (2, 18, 8), dtype=jnp.float32)
    out8 = jax.block_until_ready(moving_avg(x8, scale=4))
    assert out8.shape == (2, 4, 8)
    assert jnp.allclose(out8, _ref_moving_avg(x8, 4), atol=1e-5, rtol=1e-5)

    # 7) bf16 input (16-row sublane multiple, dense path).
    xb = jax.random.normal(ks[6], (2, 64, 16), dtype=jnp.bfloat16)
    outb = jax.block_until_ready(moving_avg(xb, scale=2))
    assert outb.shape == (2, 32, 16)
    assert jnp.allclose(outb.astype(jnp.float32),
                        _ref_moving_avg(xb, 2).astype(jnp.float32),
                        atol=2e-2, rtol=2e-2)

    print("KERNEL_OK")
</pallas_src>

<mosaic_0001>
module attributes {stable_mosaic.version = 11 : i64} {
  func.func @_pool_lane_groups_kernel(%arg0: i32, %arg1: memref<1x256xf32, #tpu.memory_space<vmem>>, %arg2: memref<1x128xf32, #tpu.memory_space<vmem>>) attributes {dimension_semantics = [#tpu.dimension_semantics<parallel>], iteration_bounds = array<i64: 1>, scalar_prefetch = 0 : i64, scratch_operands = 0 : i64, tpu.core_type = #tpu.core_type<tc>, window_params = [{transform_indices = @transform_0, window_bounds = array<i64: 1, 256>}, {transform_indices = @transform_1, window_bounds = array<i64: 1, 128>}]} {
    %c0 = arith.constant 0 : index
    %c0_0 = arith.constant 0 : index
    %0 = vector.load %arg1[%c0, %c0_0] : memref<1x256xf32, #tpu.memory_space<vmem>>, vector<1x8xf32>
    %c0_1 = arith.constant 0 : index
    %c8 = arith.constant 8 : index
    %1 = vector.load %arg1[%c0_1, %c8] : memref<1x256xf32, #tpu.memory_space<vmem>>, vector<1x8xf32>
    %2 = arith.addf %0, %1 : vector<1x8xf32>
    %cst = arith.constant 5.000000e-01 : f32
    %3 = vector.broadcast %cst : f32 to vector<1x8xf32>
    %4 = arith.mulf %2, %3 : vector<1x8xf32>
    %c0_2 = arith.constant 0 : index
    %c0_3 = arith.constant 0 : index
    %5 = vector.load %arg2[%c0_2, %c0_3] : memref<1x128xf32, #tpu.memory_space<vmem>>, vector<1x8xf32>
    tpu.vector_store %arg2[%c0_2, %c0_3], %4 {strides = array<i32>} : memref<1x128xf32, #tpu.memory_space<vmem>>, vector<1x8xf32>,
    %c0_4 = arith.constant 0 : index
    %c16 = arith.constant 16 : index
    %6 = vector.load %arg1[%c0_4, %c16] : memref<1x256xf32, #tpu.memory_space<vmem>>, vector<1x8xf32>
    %c0_5 = arith.constant 0 : index
    %c24 = arith.constant 24 : index
    %7 = vector.load %arg1[%c0_5, %c24] : memref<1x256xf32, #tpu.memory_space<vmem>>, vector<1x8xf32>
    %8 = arith.addf %6, %7 : vector<1x8xf32>
    %cst_6 = arith.constant 5.000000e-01 : f32
    %9 = vector.broadcast %cst_6 : f32 to vector<1x8xf32>
    %10 = arith.mulf %8, %9 : vector<1x8xf32>
    %c0_7 = arith.constant 0 : index
    %c8_8 = arith.constant 8 : index
    %11 = vector.load %arg2[%c0_7, %c8_8] : memref<1x128xf32, #tpu.memory_space<vmem>>, vector<1x8xf32>
    tpu.vector_store %arg2[%c0_7, %c8_8], %10 {strides = array<i32>} : memref<1x128xf32, #tpu.memory_space<vmem>>, vector<1x8xf32>,
    %c0_9 = arith.constant 0 : index
    %c32 = arith.constant 32 : index
    %12 = vector.load %arg1[%c0_9, %c32] : memref<1x256xf32, #tpu.memory_space<vmem>>, vector<1x8xf32>
    %c0_10 = arith.constant 0 : index
    %c40 = arith.constant 40 : index
    %13 = vector.load %arg1[%c0_10, %c40] : memref<1x256xf32, #tpu.memory_space<vmem>>, vector<1x8xf32>
    %14 = arith.addf %12, %13 : vector<1x8xf32>
    %cst_11 = arith.constant 5.000000e-01 : f32
    %15 = vector.broadcast %cst_11 : f32 to vector<1x8xf32>
    %16 = arith.mulf %14, %15 : vector<1x8xf32>
    %c0_12 = arith.constant 0 : index
    %c16_13 = arith.constant 16 : index
    %17 = vector.load %arg2[%c0_12, %c16_13] : memref<1x128xf32, #tpu.memory_space<vmem>>, vector<1x8xf32>
    tpu.vector_store %arg2[%c0_12, %c16_13], %16 {strides = array<i32>} : memref<1x128xf32, #tpu.memory_space<vmem>>, vector<1x8xf32>,
    %c0_14 = arith.constant 0 : index
    %c48 = arith.constant 48 : index
    %18 = vector.load %arg1[%c0_14, %c48] : memref<1x256xf32, #tpu.memory_space<vmem>>, vector<1x8xf32>
    %c0_15 = arith.constant 0 : index
    %c56 = arith.constant 56 : index
    %19 = vector.load %arg1[%c0_15, %c56] : memref<1x256xf32, #tpu.memory_space<vmem>>, vector<1x8xf32>
    %20 = arith.addf %18, %19 : vector<1x8xf32>
    %cst_16 = arith.constant 5.000000e-01 : f32
    %21 = vector.broadcast %cst_16 : f32 to vector<1x8xf32>
    %22 = arith.mulf %20, %21 : vector<1x8xf32>
    %c0_17 = arith.constant 0 : index
    %c24_18 = arith.constant 24 : index
    %23 = vector.load %arg2[%c0_17, %c24_18] : memref<1x128xf32, #tpu.memory_space<vmem>>, vector<1x8xf32>
    tpu.vector_store %arg2[%c0_17, %c24_18], %22 {strides = array<i32>} : memref<1x128xf32, #tpu.memory_space<vmem>>, vector<1x8xf32>,
    %c0_19 = arith.constant 0 : index
    %c64 = arith.constant 64 : index
    %24 = vector.load %arg1[%c0_19, %c64] : memref<1x256xf32, #tpu.memory_space<vmem>>, vector<1x8xf32>
    %c0_20 = arith.constant 0 : index
    %c72 = arith.constant 72 : index
    %25 = vector.load %arg1[%c0_20, %c72] : memref<1x256xf32, #tpu.memory_space<vmem>>, vector<1x8xf32>
    %26 = arith.addf %24, %25 : vector<1x8xf32>
    %cst_21 = arith.constant 5.000000e-01 : f32
    %27 = vector.broadcast %cst_21 : f32 to vector<1x8xf32>
    %28 = arith.mulf %26, %27 : vector<1x8xf32>
    %c0_22 = arith.constant 0 : index
    %c32_23 = arith.constant 32 : index
    %29 = vector.load %arg2[%c0_22, %c32_23] : memref<1x128xf32, #tpu.memory_space<vmem>>, vector<1x8xf32>
    tpu.vector_store %arg2[%c0_22, %c32_23], %28 {strides = array<i32>} : memref<1x128xf32, #tpu.memory_space<vmem>>, vector<1x8xf32>,
    %c0_24 = arith.constant 0 : index
    %c80 = arith.constant 80 : index
    %30 = vector.load %arg1[%c0_24, %c80] : memref<1x256xf32, #tpu.memory_space<vmem>>, vector<1x8xf32>
    %c0_25 = arith.constant 0 : index
    %c88 = arith.constant 88 : index
    %31 = vector.load %arg1[%c0_25, %c88] : memref<1x256xf32, #tpu.memory_space<vmem>>, vector<1x8xf32>
    %32 = arith.addf %30, %31 : vector<1x8xf32>
    %cst_26 = arith.constant 5.000000e-01 : f32
    %33 = vector.broadcast %cst_26 : f32 to vector<1x8xf32>
    %34 = arith.mulf %32, %33 : vector<1x8xf32>
    %c0_27 = arith.constant 0 : index
    %c40_28 = arith.constant 40 : index
    %35 = vector.load %arg2[%c0_27, %c40_28] : memref<1x128xf32, #tpu.memory_space<vmem>>, vector<1x8xf32>
    tpu.vector_store %arg2[%c0_27, %c40_28], %34 {strides = array<i32>} : memref<1x128xf32, #tpu.memory_space<vmem>>, vector<1x8xf32>,
    %c0_29 = arith.constant 0 : index
    %c96 = arith.constant 96 : index
    %36 = vector.load %arg1[%c0_29, %c96] : memref<1x256xf32, #tpu.memory_space<vmem>>, vector<1x8xf32>
    %c0_30 = arith.constant 0 : index
    %c104 = arith.constant 104 : index
    %37 = vector.load %arg1[%c0_30, %c104] : memref<1x256xf32, #tpu.memory_space<vmem>>, vector<1x8xf32>
    %38 = arith.addf %36, %37 : vector<1x8xf32>
    %cst_31 = arith.constant 5.000000e-01 : f32
    %39 = vector.broadcast %cst_31 : f32 to vector<1x8xf32>
    %40 = arith.mulf %38, %39 : vector<1x8xf32>
    %c0_32 = arith.constant 0 : index
    %c48_33 = arith.constant 48 : index
    %41 = vector.load %arg2[%c0_32, %c48_33] : memref<1x128xf32, #tpu.memory_space<vmem>>, vector<1x8xf32>
    tpu.vector_store %arg2[%c0_32, %c48_33], %40 {strides = array<i32>} : memref<1x128xf32, #tpu.memory_space<vmem>>, vector<1x8xf32>,
    %c0_34 = arith.constant 0 : index
    %c112 = arith.constant 112 : index
    %42 = vector.load %arg1[%c0_34, %c112] : memref<1x256xf32, #tpu.memory_space<vmem>>, vector<1x8xf32>
    %c0_35 = arith.constant 0 : index
    %c120 = arith.constant 120 : index
    %43 = vector.load %arg1[%c0_35, %c120] : memref<1x256xf32, #tpu.memory_space<vmem>>, vector<1x8xf32>
    %44 = arith.addf %42, %43 : vector<1x8xf32>
    %cst_36 = arith.constant 5.000000e-01 : f32
    %45 = vector.broadcast %cst_36 : f32 to vector<1x8xf32>
    %46 = arith.mulf %44, %45 : vector<1x8xf32>
    %c0_37 = arith.constant 0 : index
    %c56_38 = arith.constant 56 : index
    %47 = vector.load %arg2[%c0_37, %c56_38] : memref<1x128xf32, #tpu.memory_space<vmem>>, vector<1x8xf32>
    tpu.vector_store %arg2[%c0_37, %c56_38], %46 {strides = array<i32>} : memref<1x128xf32, #tpu.memory_space<vmem>>, vector<1x8xf32>,
    %c0_39 = arith.constant 0 : index
    %c128 = arith.constant 128 : index
    %48 = vector.load %arg1[%c0_39, %c128] : memref<1x256xf32, #tpu.memory_space<vmem>>, vector<1x8xf32>
    %c0_40 = arith.constant 0 : index
    %c136 = arith.constant 136 : index
    %49 = vector.load %arg1[%c0_40, %c136] : memref<1x256xf32, #tpu.memory_space<vmem>>, vector<1x8xf32>
    %50 = arith.addf %48, %49 : vector<1x8xf32>
    %cst_41 = arith.constant 5.000000e-01 : f32
    %51 = vector.broadcast %cst_41 : f32 to vector<1x8xf32>
    %52 = arith.mulf %50, %51 : vector<1x8xf32>
    %c0_42 = arith.constant 0 : index
    %c64_43 = arith.constant 64 : index
    %53 = vector.load %arg2[%c0_42, %c64_43] : memref<1x128xf32, #tpu.memory_space<vmem>>, vector<1x8xf32>
    tpu.vector_store %arg2[%c0_42, %c64_43], %52 {strides = array<i32>} : memref<1x128xf32, #tpu.memory_space<vmem>>, vector<1x8xf32>,
    %c0_44 = arith.constant 0 : index
    %c144 = arith.constant 144 : index
    %54 = vector.load %arg1[%c0_44, %c144] : memref<1x256xf32, #tpu.memory_space<vmem>>, vector<1x8xf32>
    %c0_45 = arith.constant 0 : index
    %c152 = arith.constant 152 : index
    %55 = vector.load %arg1[%c0_45, %c152] : memref<1x256xf32, #tpu.memory_space<vmem>>, vector<1x8xf32>
    %56 = arith.addf %54, %55 : vector<1x8xf32>
    %cst_46 = arith.constant 5.000000e-01 : f32
    %57 = vector.broadcast %cst_46 : f32 to vector<1x8xf32>
    %58 = arith.mulf %56, %57 : vector<1x8xf32>
    %c0_47 = arith.constant 0 : index
    %c72_48 = arith.constant 72 : index
    %59 = vector.load %arg2[%c0_47, %c72_48] : memref<1x128xf32, #tpu.memory_space<vmem>>, vector<1x8xf32>
    tpu.vector_store %arg2[%c0_47, %c72_48], %58 {strides = array<i32>} : memref<1x128xf32, #tpu.memory_space<vmem>>, vector<1x8xf32>,
    %c0_49 = arith.constant 0 : index
    %c160 = arith.constant 160 : index
    %60 = vector.load %arg1[%c0_49, %c160] : memref<1x256xf32, #tpu.memory_space<vmem>>, vector<1x8xf32>
    %c0_50 = arith.constant 0 : index
    %c168 = arith.constant 168 : index
    %61 = vector.load %arg1[%c0_50, %c168] : memref<1x256xf32, #tpu.memory_space<vmem>>, vector<1x8xf32>
    %62 = arith.addf %60, %61 : vector<1x8xf32>
    %cst_51 = arith.constant 5.000000e-01 : f32
    %63 = vector.broadcast %cst_51 : f32 to vector<1x8xf32>
    %64 = arith.mulf %62, %63 : vector<1x8xf32>
    %c0_52 = arith.constant 0 : index
    %c80_53 = arith.constant 80 : index
    %65 = vector.load %arg2[%c0_52, %c80_53] : memref<1x128xf32, #tpu.memory_space<vmem>>, vector<1x8xf32>
    tpu.vector_store %arg2[%c0_52, %c80_53], %64 {strides = array<i32>} : memref<1x128xf32, #tpu.memory_space<vmem>>, vector<1x8xf32>,
    %c0_54 = arith.constant 0 : index
    %c176 = arith.constant 176 : index
    %66 = vector.load %arg1[%c0_54, %c176] : memref<1x256xf32, #tpu.memory_space<vmem>>, vector<1x8xf32>
    %c0_55 = arith.constant 0 : index
    %c184 = arith.constant 184 : index
    %67 = vector.load %arg1[%c0_55, %c184] : memref<1x256xf32, #tpu.memory_space<vmem>>, vector<1x8xf32>
    %68 = arith.addf %66, %67 : vector<1x8xf32>
    %cst_56 = arith.constant 5.000000e-01 : f32
    %69 = vector.broadcast %cst_56 : f32 to vector<1x8xf32>
    %70 = arith.mulf %68, %69 : vector<1x8xf32>
    %c0_57 = arith.constant 0 : index
    %c88_58 = arith.constant 88 : index
    %71 = vector.load %arg2[%c0_57, %c88_58] : memref<1x128xf32, #tpu.memory_space<vmem>>, vector<1x8xf32>
    tpu.vector_store %arg2[%c0_57, %c88_58], %70 {strides = array<i32>} : memref<1x128xf32, #tpu.memory_space<vmem>>, vector<1x8xf32>,
    %c0_59 = arith.constant 0 : index
    %c192 = arith.constant 192 : index
    %72 = vector.load %arg1[%c0_59, %c192] : memref<1x256xf32, #tpu.memory_space<vmem>>, vector<1x8xf32>
    %c0_60 = arith.constant 0 : index
    %c200 = arith.constant 200 : index
    %73 = vector.load %arg1[%c0_60, %c200] : memref<1x256xf32, #tpu.memory_space<vmem>>, vector<1x8xf32>
    %74 = arith.addf %72, %73 : vector<1x8xf32>
    %cst_61 = arith.constant 5.000000e-01 : f32
    %75 = vector.broadcast %cst_61 : f32 to vector<1x8xf32>
    %76 = arith.mulf %74, %75 : vector<1x8xf32>
    %c0_62 = arith.constant 0 : index
    %c96_63 = arith.constant 96 : index
    %77 = vector.load %arg2[%c0_62, %c96_63] : memref<1x128xf32, #tpu.memory_space<vmem>>, vector<1x8xf32>
    tpu.vector_store %arg2[%c0_62, %c96_63], %76 {strides = array<i32>} : memref<1x128xf32, #tpu.memory_space<vmem>>, vector<1x8xf32>,
    %c0_64 = arith.constant 0 : index
    %c208 = arith.constant 208 : index
    %78 = vector.load %arg1[%c0_64, %c208] : memref<1x256xf32, #tpu.memory_space<vmem>>, vector<1x8xf32>
    %c0_65 = arith.constant 0 : index
    %c216 = arith.constant 216 : index
    %79 = vector.load %arg1[%c0_65, %c216] : memref<1x256xf32, #tpu.memory_space<vmem>>, vector<1x8xf32>
    %80 = arith.addf %78, %79 : vector<1x8xf32>
    %cst_66 = arith.constant 5.000000e-01 : f32
    %81 = vector.broadcast %cst_66 : f32 to vector<1x8xf32>
    %82 = arith.mulf %80, %81 : vector<1x8xf32>
    %c0_67 = arith.constant 0 : index
    %c104_68 = arith.constant 104 : index
    %83 = vector.load %arg2[%c0_67, %c104_68] : memref<1x128xf32, #tpu.memory_space<vmem>>, vector<1x8xf32>
    tpu.vector_store %arg2[%c0_67, %c104_68], %82 {strides = array<i32>} : memref<1x128xf32, #tpu.memory_space<vmem>>, vector<1x8xf32>,
    %c0_69 = arith.constant 0 : index
    %c224 = arith.constant 224 : index
    %84 = vector.load %arg1[%c0_69, %c224] : memref<1x256xf32, #tpu.memory_space<vmem>>, vector<1x8xf32>
    %c0_70 = arith.constant 0 : index
    %c232 = arith.constant 232 : index
    %85 = vector.load %arg1[%c0_70, %c232] : memref<1x256xf32, #tpu.memory_space<vmem>>, vector<1x8xf32>
    %86 = arith.addf %84, %85 : vector<1x8xf32>
    %cst_71 = arith.constant 5.000000e-01 : f32
    %87 = vector.broadcast %cst_71 : f32 to vector<1x8xf32>
    %88 = arith.mulf %86, %87 : vector<1x8xf32>
    %c0_72 = arith.constant 0 : index
    %c112_73 = arith.constant 112 : index
    %89 = vector.load %arg2[%c0_72, %c112_73] : memref<1x128xf32, #tpu.memory_space<vmem>>, vector<1x8xf32>
    tpu.vector_store %arg2[%c0_72, %c112_73], %88 {strides = array<i32>} : memref<1x128xf32, #tpu.memory_space<vmem>>, vector<1x8xf32>,
    %c0_74 = arith.constant 0 : index
    %c240 = arith.constant 240 : index
    %90 = vector.load %arg1[%c0_74, %c240] : memref<1x256xf32, #tpu.memory_space<vmem>>, vector<1x8xf32>
    %c0_75 = arith.constant 0 : index
    %c248 = arith.constant 248 : index
    %91 = vector.load %arg1[%c0_75, %c248] : memref<1x256xf32, #tpu.memory_space<vmem>>, vector<1x8xf32>
    %92 = arith.addf %90, %91 : vector<1x8xf32>
    %cst_76 = arith.constant 5.000000e-01 : f32
    %93 = vector.broadcast %cst_76 : f32 to vector<1x8xf32>
    %94 = arith.mulf %92, %93 : vector<1x8xf32>
    %c0_77 = arith.constant 0 : index
    %c120_78 = arith.constant 120 : index
    %95 = vector.load %arg2[%c0_77, %c120_78] : memref<1x128xf32, #tpu.memory_space<vmem>>, vector<1x8xf32>
    tpu.vector_store %arg2[%c0_77, %c120_78], %94 {strides = array<i32>} : memref<1x128xf32, #tpu.memory_space<vmem>>, vector<1x8xf32>,
    return
  }
  func.func @transform_0(%arg0: i32) -> (i32, i32) {
    %c0_i32 = arith.constant 0 : i32
    %c0_i32_0 = arith.constant 0 : i32
    return %arg0, %c0_i32 : i32, i32
  }
  func.func @transform_1(%arg0: i32) -> (i32, i32) {
    %c0_i32 = arith.constant 0 : i32
    %c0_i32_0 = arith.constant 0 : i32
    return %arg0, %c0_i32 : i32, i32
  }
}

</mosaic_0001>

<bundles_post_ra>
// kernel: tpu_custom_call.1
= control target key start
LH: loop header
LB: loop body
LE: loop exit
PB: predicated region body
PF: predicated region fallthrough
CT: control target
= control target key end

     0   :  { %6 = vsyncpa [#allocation3], 0  ;;  %s452_s0 = inlined_call_operand.hbm [shape: f32[1,256], index: 0, kind: input, shape index: {}]   ;;  %s453_s1 = inlined_call_operand.hbm [shape: f32[1,128], index: 1, kind: output, shape index: {}]  }
   0x1   :  { %7 = vsyncpa [#allocation4], 0  ;;  %s361_s6 = smov [#allocation2]  }
   0x2   :  { %s14_s7 = sshll.u32 %s361_s6, 4  ;;  %s15_s7 = int_to_ptr.vmem [resolvable:$true] %s14_s7 }
   0x3   :  { %s325_s8 = scalar_lea.vmem %s15_s7, 32  ;;  %p330_p1 = scmp.lt.s32.totalorder %s15_s7, %s15_s7 }
   0x4   :  { %p326_p0 = scmp.ne.s32.totalorder %s15_s7, %s325_s8  ;;  %p331_p2 = scmp.lt.s32.totalorder %s325_s8, %s325_s8 }
   0x6   :  { %p332_p3 = por %p331_p2, %p330_p1 }
   0x8   :  { %p333_p4 = pnand %p332_p3, %p326_p0 }
   0xa   :  { %336 = shalt.err (!%p333_p4)
}
   0xb   :  { %17 = dma.hbm_to_vmem [thread:$0]  %s452_s0, 32, %s15_s7, [#allocation3]  }
   0xc   :  { %357 = dma.done.wait [#allocation3], 32  }
   0xd   :  { %358 = vsyncadd [#allocation3], 4294967264  ;;  %v30_v0 = vld [vmem:[#allocation2] sm:$0x1]  ;;  %s362_s11 = smov 120   ;;  %v38_v16 = vlaneseq  ;;  %s363_s0 = smov 104  }
   0xe   :  { %v64_v1 = vld [vmem:[#allocation2] sm:$0x1]  ;;  %32 = vrot.lane.b32.xlu0 %v30_v0, %s362_s11  ;;  %v149_v7 = vld [vmem:[#allocation2 + $0x1] sm:$0x1]  ;;  %s364_s12 = smov 112   ;;  %s365_s13 = smov 96  }
   0xf   :  { %66 = vrot.lane.b32.xlu1 %v64_v1, %s362_s11  ;;  %v47_v2 = vld [vmem:[#allocation2] sm:$0x1]  ;;  %v166_v8 = vld [vmem:[#allocation2 + $0x1] sm:$0x1]  ;;  %v39_v17 = vshrl.u32 %v38_v16, 7  ;;  %s366_s14 = smov 88  }
  0x10   :  { %v81_v3 = vld [vmem:[#allocation2] sm:$0x1]  ;;  %v183_v9 = vld [vmem:[#allocation2 + $0x1] sm:$0x1]  ;;  %s367_s15 = smov 80   ;;  %s368_s16 = smov 72  }
  0x11   :  { %v98_v4 = vld [vmem:[#allocation2] sm:$0x1]  ;;  %v401_v10 = vld [vmem:[#allocation2 + $0x1] sm:$0x1]  ;;  %v425_v20 = vsub.s32 0, %v39_v17  ;;  %s369_s17 = smov 64  }
  0x12   :  { %49 = vrot.lane.b32.xlu0 %v47_v2, %s362_s11  ;;  %v115_v5 = vld [vmem:[#allocation2] sm:$0x1]  ;;  %v403_v11 = vld [vmem:[#allocation2 + $0x1] sm:$0x1]  ;;  %s370_s18 = smov 56   ;;  %s371_s19 = smov 48  }
  0x13   :  { %83 = vrot.lane.b32.xlu1 %v81_v3, %s362_s11  ;;  %v132_v6 = vld [vmem:[#allocation2] sm:$0x1]  ;;  %v409_v12 = vld [vmem:[#allocation2 + $0x1] sm:$0x1]  ;;  %s372_s20 = smov 40   ;;  %vm28_vm0 = vcmask 57344  }
  0x14   :  { %v411_v13 = vld [vmem:[#allocation2 + $0x1] sm:$0x1]  ;;  %v419_v15 = vld [vmem:[#allocation2] sm:$0x1]  ;;  %s373_s21 = smov 32   ;;  %s374_s22 = smov 24  }
  0x15   :  { %v417_v14 = vld [vmem:[#allocation2 + $0x1] sm:$0x1]  ;;  %s375_s23 = smov 16   ;;  %s376_s24 = smov 8   ;;  %vm45_vm1 = vcmask 122944   ;;  %vm62_vm2 = vcmask 188544  }
  0x16   :  { %100 = vrot.lane.b32.xlu0 %v98_v4, %s362_s11  ;;  %vm79_vm3 = vcmask 254144   ;;  %vm96_vm4 = vcmask 319744   ;;  %vm113_vm5 = vcmask 385344   ;;  %vm130_vm6 = vcmask 450944   ;;  %s377_s25 = smov [#allocation5]  }
  0x17   :  { %117 = vrot.lane.b32.xlu1 %v115_v5, %s362_s11  ;;  %vm147_vm7 = vcmask 516544   ;;  %vm164_vm8 = vcmask 582144   ;;  %vm181_vm9 = vcmask 647744   ;;  %vm198_vm10 = vcmask 713344   ;;  %s291_s26 = sshll.u32 %s377_s25, 4  ;;  %s292_s26 = int_to_ptr.vmem [resolvable:$true] %s291_s26 }
  0x18   :  { %vm215_vm11 = vcmask 778944   ;;  %vm232_vm12 = vcmask 844544   ;;  %vm249_vm13 = vcmask 910144   ;;  %vm266_vm14 = vcmask 975744   ;;  %s337_s27 = scalar_lea.vmem %s292_s26, 16  ;;  %s341_s28 = scalar_lea.vmem %s292_s26, 32 }
  0x19   :  { %vm283_vm15 = vcmask 1041344   ;;  %p338_p5 = scmp.ne.s32.totalorder %s292_s26, %s337_s27  ;;  %p342_p6 = scmp.lt.s32.totalorder %s292_s26, %s292_s26 }
  0x1a   :  { %134 = vrot.lane.b32.xlu0 %v132_v6, %s362_s11  ;;  %p343_p7 = scmp.lt.s32.totalorder %s341_s28, %s337_s27 }
  0x1b   :  { %151 = vrot.lane.b32.xlu1 %v149_v7, %s362_s11 }
  0x1c   :  { %p344_p8 = por %p343_p7, %p342_p6 }
  0x1e   :  { %168 = vrot.lane.b32.xlu0 %v166_v8, %s362_s11  ;;  %p345_p9 = pnand %p344_p8, %p338_p5 }
  0x1f   :  { %185 = vrot.lane.b32.xlu1 %v183_v9, %s362_s11 }
  0x22   :  { %202 = vrot.lane.b32.xlu0 %v401_v10, %s362_s11 }
  0x23   :  { %219 = vrot.lane.b32.xlu1 %v403_v11, %s362_s11 }
  0x26   :  { %236 = vrot.lane.b32.xlu0 %v409_v12, %s362_s11 }
  0x27   :  { %253 = vrot.lane.b32.xlu1 %v411_v13, %s362_s11 }
  0x2a   :  { %270 = vrot.lane.b32.xlu0 %v417_v14, %s362_s11 }
  0x2b   :  { %23 = vrot.lane.b32.xlu1 %v419_v15, %s362_s11 }
  0x80   :  { %v33_v18 = vpop.permute.xlu0 %32 }
  0x81   :  { %v67_v19 = vpop.permute.xlu1 %66  ;;  %v35_v21 = vadd.f32 %v33_v18, %v30_v0 }
  0x82   :  { %v69_v22 = vadd.f32 %v67_v19, %v64_v1 }
  0x83   :  { %v36_v23 = vmul.f32 0.5, %v35_v21 }
  0x84   :  { %v70_v24 = vmul.f32 0.5, %v69_v22  ;;  %v50_v25 = vpop.permute.xlu0 %49 }
  0x85   :  { %v84_v26 = vpop.permute.xlu1 %83  ;;  %v41_v27 = vrot.slane %v36_v23, %v425_v20  ;;  %v52_v28 = vadd.f32 %v50_v25, %v47_v2 }
  0x86   :  { %v86_v29 = vadd.f32 %v84_v26, %v81_v3  ;;  %v75_v30 = vrot.slane %v70_v24, %v425_v20 }
  0x87   :  { %v53_v31 = vmul.f32 0.5, %v52_v28  ;;  %42 = vrot.lane.b32.xlu0 %v41_v27, %s362_s11 }
  0x88   :  { %v87_v32 = vmul.f32 0.5, %v86_v29  ;;  %v101_v33 = vpop.permute.xlu0 %100 }
  0x89   :  { %v118_v34 = vpop.permute.xlu1 %117  ;;  %v58_v35 = vrot.slane %v53_v31, %v425_v20  ;;  %v103_v36 = vadd.f32 %v101_v33, %v98_v4 }
  0x8a   :  { %v120_v37 = vadd.f32 %v118_v34, %v115_v5  ;;  %v92_v38 = vrot.slane %v87_v32, %v425_v20 }
  0x8b   :  { %v104_v39 = vmul.f32 0.5, %v103_v36  ;;  %76 = vrot.lane.b32.xlu0 %v75_v30, %s363_s0  ;;  %59 = vrot.lane.b32.xlu1 %v58_v35, %s364_s12 }
  0x8c   :  { %v121_v40 = vmul.f32 0.5, %v120_v37  ;;  %v135_v41 = vpop.permute.xlu0 %134 }
  0x8d   :  { %v152_v42 = vpop.permute.xlu1 %151  ;;  %v109_v43 = vrot.slane %v104_v39, %v425_v20  ;;  %v137_v44 = vadd.f32 %v135_v41, %v132_v6 }
  0x8e   :  { %v154_v45 = vadd.f32 %v152_v42, %v149_v7  ;;  %v126_v46 = vrot.slane %v121_v40, %v425_v20 }
  0x8f   :  { %v138_v47 = vmul.f32 0.5, %v137_v44  ;;  %93 = vrot.lane.b32.xlu1 %v92_v38, %s365_s13  ;;  %110 = vrot.lane.b32.xlu0 %v109_v43, %s366_s14 }
  0x90   :  { %v155_v48 = vmul.f32 0.5, %v154_v45  ;;  %v169_v49 = vpop.permute.xlu0 %168 }
  0x91   :  { %v186_v50 = vpop.permute.xlu1 %185  ;;  %v143_v51 = vrot.slane %v138_v47, %v425_v20  ;;  %v171_v52 = vadd.f32 %v169_v49, %v166_v8 }
  0x92   :  { %v188_v53 = vadd.f32 %v186_v50, %v183_v9  ;;  %v160_v54 = vrot.slane %v155_v48, %v425_v20 }
  0x93   :  { %v172_v55 = vmul.f32 0.5, %v171_v52  ;;  %127 = vrot.lane.b32.xlu1 %v126_v46, %s367_s15  ;;  %144 = vrot.lane.b32.xlu0 %v143_v51, %s368_s16 }
  0x94   :  { %v189_v56 = vmul.f32 0.5, %v188_v53  ;;  %v203_v57 = vpop.permute.xlu0 %202 }
  0x95   :  { %v220_v58 = vpop.permute.xlu1 %219  ;;  %v177_v59 = vrot.slane %v172_v55, %v425_v20  ;;  %v205_v60 = vadd.f32 %v203_v57, %v401_v10 }
  0x96   :  { %v222_v61 = vadd.f32 %v220_v58, %v403_v11  ;;  %v194_v62 = vrot.slane %v189_v56, %v425_v20 }
  0x97   :  { %v206_v63 = vmul.f32 0.5, %v205_v60  ;;  %161 = vrot.lane.b32.xlu1 %v160_v54, %s369_s17  ;;  %178 = vrot.lane.b32.xlu0 %v177_v59, %s370_s18 }
  0x98   :  { %v223_v0 = vmul.f32 0.5, %v222_v61  ;;  %v237_v1 = vpop.permute.xlu0 %236 }
  0x99   :  { %v254_v2 = vpop.permute.xlu1 %253  ;;  %v211_v3 = vrot.slane %v206_v63, %v425_v20  ;;  %v239_v4 = vadd.f32 %v237_v1, %v409_v12 }
  0x9a   :  { %v256_v5 = vadd.f32 %v254_v2, %v411_v13  ;;  %v228_v6 = vrot.slane %v223_v0, %v425_v20 }
  0x9b   :  { %v240_v7 = vmul.f32 0.5, %v239_v4  ;;  %195 = vrot.lane.b32.xlu1 %v194_v62, %s371_s19  ;;  %212 = vrot.lane.b32.xlu0 %v211_v3, %s372_s20 }
  0x9c   :  { %v257_v8 = vmul.f32 0.5, %v256_v5  ;;  %v271_v9 = vpop.permute.xlu0 %270 }
  0x9d   :  { %v24_v10 = vpop.permute.xlu1 %23  ;;  %v245_v11 = vrot.slane %v240_v7, %v425_v20  ;;  %v273_v16 = vadd.f32 %v271_v9, %v417_v14 }
  0x9e   :  { %v26_v17 = vadd.f32 %v24_v10, %v419_v15  ;;  %v262_v12 = vrot.slane %v257_v8, %v425_v20 }
  0x9f   :  { %v274_v13 = vmul.f32 0.5, %v273_v16  ;;  %229 = vrot.lane.b32.xlu1 %v228_v6, %s373_s21  ;;  %246 = vrot.lane.b32.xlu0 %v245_v11, %s374_s22 }
  0xa0   :  { %v27_v18 = vmul.f32 0.5, %v26_v17 }
  0xa1   :  { %v279_v19 = vrot.slane %v274_v13, %v425_v20 }
  0xa2   :  { %29 = vst.msk [vmem:[#allocation5] sm:$0x1] %vm28_vm0, %v27_v18 }
  0xa3   :  { %263 = vrot.lane.b32.xlu1 %v262_v12, %s375_s23  ;;  %280 = vrot.lane.b32.xlu0 %v279_v19, %s376_s24 }
  0xf9   :  { %v43_v14 = vpop.permute.xlu0 %42 }
  0xfa   :  { %46 = vst.msk [vmem:[#allocation5] sm:$0x1] %vm45_vm1, %v43_v14 }
  0xfd   :  { %v77_v15 = vpop.permute.xlu0 %76  ;;  %v60_v21 = vpop.permute.xlu1 %59 }
  0xfe   :  { %63 = vst.msk [vmem:[#allocation5] sm:$0x1] %vm62_vm2, %v60_v21 }
  0xff   :  { %80 = vst.msk [vmem:[#allocation5] sm:$0x1] %vm79_vm3, %v77_v15 }
 0x101   :  { %v94_v22 = vpop.permute.xlu1 %93  ;;  %v111_v23 = vpop.permute.xlu0 %110 }
 0x102   :  { %97 = vst.msk [vmem:[#allocation5] sm:$0x1] %vm96_vm4, %v94_v22 }
 0x103   :  { %114 = vst.msk [vmem:[#allocation5] sm:$0x1] %vm113_vm5, %v111_v23 }
 0x105   :  { %v128_v20 = vpop.permute.xlu1 %127  ;;  %v145_v24 = vpop.permute.xlu0 %144 }
 0x106   :  { %131 = vst.msk [vmem:[#allocation5] sm:$0x1] %vm130_vm6, %v128_v20 }
 0x107   :  { %148 = vst.msk [vmem:[#allocation5] sm:$0x1] %vm147_vm7, %v145_v24 }
 0x109   :  { %v162_v25 = vpop.permute.xlu1 %161  ;;  %v179_v26 = vpop.permute.xlu0 %178 }
 0x10a   :  { %165 = vst.msk [vmem:[#allocation5] sm:$0x1] %vm164_vm8, %v162_v25 }
 0x10b   :  { %182 = vst.msk [vmem:[#allocation5] sm:$0x1] %vm181_vm9, %v179_v26 }
 0x10d   :  { %v196_v27 = vpop.permute.xlu1 %195  ;;  %v213_v28 = vpop.permute.xlu0 %212 }
 0x10e   :  { %199 = vst.msk [vmem:[#allocation5] sm:$0x1] %vm198_vm10, %v196_v27 }
 0x10f   :  { %216 = vst.msk [vmem:[#allocation5] sm:$0x1] %vm215_vm11, %v213_v28 }
 0x111   :  { %v230_v29 = vpop.permute.xlu1 %229  ;;  %v247_v30 = vpop.permute.xlu0 %246 }
 0x112   :  { %233 = vst.msk [vmem:[#allocation5] sm:$0x1] %vm232_vm12, %v230_v29 }
 0x113   :  { %250 = vst.msk [vmem:[#allocation5] sm:$0x1] %vm249_vm13, %v247_v30 }
 0x115   :  { %v264_v31 = vpop.permute.xlu1 %263  ;;  %v281_v32 = vpop.permute.xlu0 %280 }
 0x116   :  { %267 = vst.msk [vmem:[#allocation5] sm:$0x1] %vm266_vm14, %v264_v31 }
 0x117   :  { %284 = vst.msk [vmem:[#allocation5] sm:$0x1] %vm283_vm15, %v281_v32 }
 0x118   :  { %348 = shalt.err (!%p345_p9)
}
 0x119   :  { %294 = dma.vmem_to_hbm [thread:$0]  %s292_s26, 16, %s453_s1, [#allocation4]  }
 0x11a   :  { %359 = dma.done.wait [#allocation4], 16  }
 0x11b   :  { %360 = vsyncadd [#allocation4], 4294967280 }
 0x11c   :  { %298 = vsyncpa [#allocation3], 1 }
 0x11d   :  { %299 = vsyncpa [#allocation4], 1 }

</bundles_post_ra>
